<compile_context>
chip_gen: v5e
topology: v5e:2x2
jax: 0.10.0
libtpu: 0.0.40
codegen_flags: <defaults>
</compile_context>

<pallas_src>
import functools
import math

import jax
import jax.numpy as jnp
from jax import lax
from jax.experimental import pallas as pl
from jax.experimental.pallas import tpu as pltpu

_BN_EPS = 1e-5
_LANE = 128


def _fused_forward_kernel(x_ref, p_ref, o_ref, *, n_rows, d):
    """Both TemplateModel branches (BN + folded Linear) in ONE launch.

    x_ref: (2*n_rows, d)   rows [0:n_rows] = x['a'], rows [n_rows:] = y
                           (already reshaped to (-1, 10) in the jitted wrapper).
    p_ref: (d+1, K_pad)    rows [0:d] = diag(bn_gamma) @ W^T (lane-padded),
                           row  [d]   = bn_beta @ W^T + b    (lane-padded).
    o_ref: (2*n_rows, K_pad)  out1 stacked over out2, full-lane stores.
    """
    w = p_ref[0:d, :]          # (d, K_pad)  -- static ref slice, zero cost
    b = p_ref[d:d + 1, :]      # (1, K_pad)

    x = x_ref[...].astype(jnp.float32)            # (2n, d)
    two_n = 2 * n_rows
    inv_n = 1.0 / n_rows

    # Per-branch train-mode BatchNorm1d statistics via masked sublane (axis-0)
    # reductions: batch on sublanes, features on lanes (cheap XLU reduces).
    row = lax.broadcasted_iota(jnp.int32, (two_n, 1), 0)
    is_a = row < n_rows                           # (2n, 1) branch mask

    zero = jnp.zeros_like(x)
    sum_a = jnp.sum(jnp.where(is_a, x, zero), axis=0, keepdims=True)   # (1, d)
    sum_b = jnp.sum(jnp.where(is_a, zero, x), axis=0, keepdims=True)   # (1, d)
    mean = jnp.where(is_a, sum_a * inv_n, sum_b * inv_n)               # (2n, d)

    c = x - mean
    c2 = c * c
    var_a = jnp.sum(jnp.where(is_a, c2, zero), axis=0, keepdims=True) * inv_n
    var_b = jnp.sum(jnp.where(is_a, zero, c2), axis=0, keepdims=True) * inv_n
    rstd = jnp.where(is_a,
                     lax.rsqrt(var_a + _BN_EPS),
                     lax.rsqrt(var_b + _BN_EPS))                       # (2n, d)

    xn = c * rstd

    # BN affine + Linear folded into (w, b): ONE MXU matmul for both branches.
    out = jnp.dot(xn, w, preferred_element_type=jnp.float32) + b
    o_ref[...] = out.astype(o_ref.dtype)


def _prep(t, mix_data, in_features):
    # TemplateModel.forward__standard input reshaping (layout-only).
    if mix_data:
        # TODO(synk): torch's .view after .permute needs contiguity; this
        # reshape/transpose approximates the intended "wrong implementation"
        # element order rather than torch's exact op sequence.
        t = jnp.reshape(jnp.reshape(t, (in_features, -1)).T, (-1, in_features))
    else:
        t = jnp.reshape(t, (-1, in_features))
    return t.astype(jnp.float32)


@functools.partial(jax.jit,
                   static_argnames=("mix_data", "in_features", "out_features"))
def _forward(xa_raw, y_raw, params, *, mix_data, in_features, out_features):
    xa = _prep(xa_raw, mix_data, in_features)
    yb = _prep(y_raw, mix_data, in_features)
    n = xa.shape[0]
    assert yb.shape[0] == n, "out1 + out2 requires matching batch sizes"

    # Stack both branch inputs -> one input DMA, one matmul in the kernel.
    x = jnp.concatenate([xa, yb], axis=0)          # (2N, D)
    k_pad = params.shape[1]

    vmem = pl.BlockSpec(memory_space=pltpu.MemorySpace.VMEM)
    out = pl.pallas_call(
        functools.partial(_fused_forward_kernel, n_rows=n, d=in_features),
        out_shape=jax.ShapeDtypeStruct((2 * n, k_pad), jnp.float32),
        in_specs=[vmem, vmem],
        out_specs=vmem,
    )(x, params)

    # Strip lane padding + split branches; out3 is a trivial fused XLA add.
    out1 = out[:n, :out_features]
    out2 = out[n:, :out_features]
    out3 = out1 + out2
    return out1, out2, out3


class DictInputDictOutputModel:
    """JAX/Pallas port of the PyTorch DictInputDictOutputModel."""

    # TODO(synk): train-mode BatchNorm1d's running_mean/running_var update side
    # effect is not modeled (forward outputs are unaffected).

    def __init__(self, key, mix_data=False, in_features=10, out_features=5):
        self.mix_data = mix_data
        self.in_features = in_features
        self.out_features = out_features

        k_w, k_b = jax.random.split(key)
        # nn.Linear init: U(-1/sqrt(fan_in), 1/sqrt(fan_in)) for weight & bias.
        bound = 1.0 / math.sqrt(in_features)
        w = jax.random.uniform(k_w, (out_features, in_features), jnp.float32,
                               minval=-bound, maxval=bound)
        b = jax.random.uniform(k_b, (out_features,), jnp.float32,
                               minval=-bound, maxval=bound)
        # BatchNorm1d affine params at init.
        gamma = jnp.ones((in_features,), jnp.float32)
        beta = jnp.zeros((in_features,), jnp.float32)

        # Exact fold of the BN affine into the linear layer:
        #   linear(bn(x)) = xhat @ (diag(gamma) W^T) + (beta @ W^T + b)
        w_eff = gamma[:, None] * w.T              # (D, K)
        b_eff = beta @ w.T + b                    # (K,)

        # Single lane-padded parameter buffer: weight rows + bias row.
        k_pad = ((out_features + _LANE - 1) // _LANE) * _LANE
        params = jnp.zeros((in_features + 1, k_pad), jnp.float32)
        params = params.at[:in_features, :out_features].set(w_eff)
        params = params.at[in_features, :out_features].set(b_eff)
        self.params = params

        # Raw params kept only for the reference check below.
        self.w = w
        self.b = b

    def __call__(self, y, x, z, w):
        del z, w  # accepted but unused by the original forward
        out1, out2, out3 = _forward(
            x['a'], y, self.params,
            mix_data=self.mix_data,
            in_features=self.in_features,
            out_features=self.out_features)
        return {1: out1, 2: out2, 3: [out1, out3]}


def _reference_forward(model, y, x):
    """Pure-JAX reference (train-mode BatchNorm1d + Linear)."""
    def fwd(t):
        t = jnp.reshape(t, (-1, model.in_features)).astype(jnp.float32)
        mean = jnp.mean(t, axis=0, keepdims=True)
        var = jnp.mean((t - mean) ** 2, axis=0, keepdims=True)
        xn = (t - mean) / jnp.sqrt(var + _BN_EPS)
        return xn @ model.w.T + model.b

    o1 = fwd(x['a'])
    o2 = fwd(y)
    return o1, o2, o1 + o2


if __name__ == "__main__":
    key = jax.random.PRNGKey(0)
    k_params, k_xa, k_y = jax.random.split(key, 3)

    # Shapes taken from the module's own input_array:
    #   {'w': 42, 'x': {'a': (3,5,2)}, 'y': (3,1,5,2), 'z': scalar}
    x = {'a': jax.random.uniform(k_xa, (3, 5, 2), dtype=jnp.float32)}
    y = jax.random.uniform(k_y, (3, 1, 5, 2), dtype=jnp.float32)
    z = jnp.array(2, dtype=jnp.int32)
    w = 42

    model = DictInputDictOutputModel(k_params)
    out = model(y, x, z, w)
    out = jax.block_until_ready(out)

    # Sanity check against a plain-JAX reference.
    ref1, ref2, ref3 = _reference_forward(model, y, x)
    assert out[1].shape == (3, 5)
    assert out[2].shape == (3, 5)
    assert out[3][1].shape == (3, 5)
    assert jnp.allclose(out[1], ref1, atol=1e-4, rtol=1e-4)
    assert jnp.allclose(out[2], ref2, atol=1e-4, rtol=1e-4)
    assert jnp.allclose(out[3][0], ref1, atol=1e-4, rtol=1e-4)
    assert jnp.allclose(out[3][1], ref3, atol=1e-4, rtol=1e-4)

    print("KERNEL_OK")
</pallas_src>

<mosaic_0001>
module attributes {stable_mosaic.version = 11 : i64} {
  func.func @_fused_forward_kernel(%arg0: memref<6x10xf32, #tpu.memory_space<vmem>>, %arg1: memref<11x128xf32, #tpu.memory_space<vmem>>, %arg2: memref<6x128xf32, #tpu.memory_space<vmem>>) attributes {dimension_semantics = [], scalar_prefetch = 0 : i64, scratch_operands = 0 : i64, tpu.core_type = #tpu.core_type<tc>} {
    %c0 = arith.constant 0 : index
    %c0_0 = arith.constant 0 : index
    %0 = vector.load %arg1[%c0, %c0_0] : memref<11x128xf32, #tpu.memory_space<vmem>>, vector<10x128xf32>
    %c10 = arith.constant 10 : index
    %c0_1 = arith.constant 0 : index
    %1 = vector.load %arg1[%c10, %c0_1] : memref<11x128xf32, #tpu.memory_space<vmem>>, vector<1x128xf32>
    %c0_2 = arith.constant 0 : index
    %c0_3 = arith.constant 0 : index
    %2 = vector.load %arg0[%c0_2, %c0_3] : memref<6x10xf32, #tpu.memory_space<vmem>>, vector<6x10xf32>
    %3 = tpu.iota {dimensions = array<i32: 0>} : vector<6x1xi32>
    %c3_i32 = arith.constant 3 : i32
    %4 = vector.broadcast %c3_i32 : i32 to vector<6x1xi32>
    %5 = arith.cmpi slt, %3, %4 : vector<6x1xi32>
    %cst = arith.constant 0.000000e+00 : f32
    %6 = vector.broadcast %cst : f32 to vector<6x10xf32>
    %7 = vector.shape_cast %5 : vector<6x1xi1> to vector<6x1xi1>
    %8 = vector.broadcast %7 : vector<6x1xi1> to vector<6x10xi1>
    %9 = arith.select %8, %2, %6 : vector<6x10xi1>, vector<6x10xf32>
    %cst_4 = arith.constant dense<0.000000e+00> : vector<10xf32>
    %10 = vector.multi_reduction <add>, %9, %cst_4 [0] : vector<6x10xf32> to vector<10xf32>
    %11 = vector.shape_cast %10 : vector<10xf32> to vector<1x10xf32>
    %12 = vector.shape_cast %5 : vector<6x1xi1> to vector<6x1xi1>
    %13 = vector.broadcast %12 : vector<6x1xi1> to vector<6x10xi1>
    %14 = arith.select %13, %6, %2 : vector<6x10xi1>, vector<6x10xf32>
    %cst_5 = arith.constant dense<0.000000e+00> : vector<10xf32>
    %15 = vector.multi_reduction <add>, %14, %cst_5 [0] : vector<6x10xf32> to vector<10xf32>
    %16 = vector.shape_cast %15 : vector<10xf32> to vector<1x10xf32>
    %cst_6 = arith.constant 0.333333343 : f32
    %17 = vector.broadcast %cst_6 : f32 to vector<1x10xf32>
    %18 = arith.mulf %11, %17 : vector<1x10xf32>
    %cst_7 = arith.constant 0.333333343 : f32
    %19 = vector.broadcast %cst_7 : f32 to vector<1x10xf32>
    %20 = arith.mulf %16, %19 : vector<1x10xf32>
    %21 = vector.shape_cast %5 : vector<6x1xi1> to vector<6x1xi1>
    %22 = vector.broadcast %21 : vector<6x1xi1> to vector<6x10xi1>
    %23 = vector.shape_cast %18 : vector<1x10xf32> to vector<1x10xf32>
    %24 = vector.broadcast %23 : vector<1x10xf32> to vector<6x10xf32>
    %25 = vector.shape_cast %20 : vector<1x10xf32> to vector<1x10xf32>
    %26 = vector.broadcast %25 : vector<1x10xf32> to vector<6x10xf32>
    %27 = arith.select %22, %24, %26 : vector<6x10xi1>, vector<6x10xf32>
    %28 = arith.subf %2, %27 : vector<6x10xf32>
    %29 = arith.mulf %28, %28 : vector<6x10xf32>
    %30 = vector.shape_cast %5 : vector<6x1xi1> to vector<6x1xi1>
    %31 = vector.broadcast %30 : vector<6x1xi1> to vector<6x10xi1>
    %32 = arith.select %31, %29, %6 : vector<6x10xi1>, vector<6x10xf32>
    %cst_8 = arith.constant dense<0.000000e+00> : vector<10xf32>
    %33 = vector.multi_reduction <add>, %32, %cst_8 [0] : vector<6x10xf32> to vector<10xf32>
    %34 = vector.shape_cast %33 : vector<10xf32> to vector<1x10xf32>
    %cst_9 = arith.constant 0.333333343 : f32
    %35 = vector.broadcast %cst_9 : f32 to vector<1x10xf32>
    %36 = arith.mulf %34, %35 : vector<1x10xf32>
    %37 = vector.shape_cast %5 : vector<6x1xi1> to vector<6x1xi1>
    %38 = vector.broadcast %37 : vector<6x1xi1> to vector<6x10xi1>
    %39 = arith.select %38, %6, %29 : vector<6x10xi1>, vector<6x10xf32>
    %cst_10 = arith.constant dense<0.000000e+00> : vector<10xf32>
    %40 = vector.multi_reduction <add>, %39, %cst_10 [0] : vector<6x10xf32> to vector<10xf32>
    %41 = vector.shape_cast %40 : vector<10xf32> to vector<1x10xf32>
    %cst_11 = arith.constant 0.333333343 : f32
    %42 = vector.broadcast %cst_11 : f32 to vector<1x10xf32>
    %43 = arith.mulf %41, %42 : vector<1x10xf32>
    %cst_12 = arith.constant 9.99999974E-6 : f32
    %44 = vector.broadcast %cst_12 : f32 to vector<1x10xf32>
    %45 = arith.addf %36, %44 : vector<1x10xf32>
    %46 = math.rsqrt %45 : vector<1x10xf32>
    %cst_13 = arith.constant 9.99999974E-6 : f32
    %47 = vector.broadcast %cst_13 : f32 to vector<1x10xf32>
    %48 = arith.addf %43, %47 : vector<1x10xf32>
    %49 = math.rsqrt %48 : vector<1x10xf32>
    %50 = vector.shape_cast %5 : vector<6x1xi1> to vector<6x1xi1>
    %51 = vector.broadcast %50 : vector<6x1xi1> to vector<6x10xi1>
    %52 = vector.shape_cast %46 : vector<1x10xf32> to vector<1x10xf32>
    %53 = vector.broadcast %52 : vector<1x10xf32> to vector<6x10xf32>
    %54 = vector.shape_cast %49 : vector<1x10xf32> to vector<1x10xf32>
    %55 = vector.broadcast %54 : vector<1x10xf32> to vector<6x10xf32>
    %56 = arith.select %51, %53, %55 : vector<6x10xi1>, vector<6x10xf32>
    %57 = arith.mulf %28, %56 : vector<6x10xf32>
    %cst_14 = arith.constant dense<0.000000e+00> : vector<6x128xf32>
    %58 = tpu.matmul %57, %0, %cst_14 {dimension_numbers = #tpu.dot_dimension_numbers<[1], [0], [0], [1], [0, 0, 1, 1], [], []>} : vector<6x10xf32>, vector<10x128xf32>, vector<6x128xf32> -> vector<6x128xf32>
    %59 = vector.broadcast %1 : vector<1x128xf32> to vector<6x128xf32>
    %60 = arith.addf %58, %59 : vector<6x128xf32>
    %c0_15 = arith.constant 0 : index
    %c0_16 = arith.constant 0 : index
    %61 = vector.load %arg2[%c0_15, %c0_16] : memref<6x128xf32, #tpu.memory_space<vmem>>, vector<6x128xf32>
    tpu.vector_store %arg2[%c0_15, %c0_16], %60 {strides = array<i32>} : memref<6x128xf32, #tpu.memory_space<vmem>>, vector<6x128xf32>,
    return
  }
}

</mosaic_0001>

<bundles_post_ra>
// kernel: _forward.1
= control target key start
LH: loop header
LB: loop body
LE: loop exit
PB: predicated region body
PF: predicated region fallthrough
CT: control target
= control target key end

     0   :  { %vm89_vm0 = vcmask 1041408   ;;  %v15_v0 = vlaneseq  ;;  %vm21_vm1 = vcmask 78848   ;;  %vm85_vm9 = vcmask 80896   ;;  %s174_s1 = inlined_call_operand.vmem [shape: f32[11,128], index: 1, kind: input, shape index: {}]   ;;  %s175_s0 = inlined_call_operand.vmem [shape: f32[6,10], index: 0, kind: input, shape index: {}]   ;;  %s176_s2 = inlined_call_operand.vmem [shape: f32[6,128], index: 2, kind: output, shape index: {}]  }
   0x1   :  { %v12_v1 = vld [vmem:[%s174_s1 + $0x8] sm:$0x3]  ;;  %v11_v2 = vld [vmem:[%s174_s1] sm:$0xff]  ;;  %v120_v62 = vld [vmem:[%s174_s1 + $0xa] ss:$0 sm:$0xff] }
   0x2   :  { %118 = vmatpush.msk.msra.mxu0 %vm89_vm0, %v12_v1  ;;  %v14_v3 = vld [vmem:[%s175_s0] sm:$0x3f]  ;;  %v149_v4 = vshrl.u32 %v15_v0, 7 }
   0x4   :  { %108 = vmatpush.msra.mxu0 %v11_v2  ;;  %vm17_vm2 = vcmp.lt.s32.totalorder %v149_v4, 3 }
   0x5   :  { %v20_v5 = vsel %vm17_vm2, %v14_v3, 0.0  ;;  %v29_v6 = vsel %vm17_vm2, 0.0, %v14_v3 }
   0x6   :  { %v22_v7 = vsel %vm21_vm1, %v20_v5, 0.0  ;;  %v30_v8 = vsel %vm21_vm1, %v29_v6, 0.0 }
   0x7   :  { %v23_v9 = vrot.slane %v22_v7, 4  ;;  %v31_v10 = vrot.slane %v30_v8, 4 }
   0x9   :  { %v24_v11 = vadd.f32 %v23_v9, %v22_v7  ;;  %v32_v12 = vadd.f32 %v31_v10, %v30_v8 }
   0xb   :  { %v25_v13 = vrot.slane %v24_v11, 2  ;;  %v33_v14 = vrot.slane %v32_v12, 2 }
   0xd   :  { %v26_v15 = vadd.f32 %v25_v13, %v24_v11  ;;  %v34_v16 = vadd.f32 %v33_v14, %v32_v12 }
   0xf   :  { %v27_v17 = vrot.slane %v26_v15, 1  ;;  %v35_v18 = vrot.slane %v34_v16, 1 }
  0x11   :  { %v28_v19 = vadd.f32 %v27_v17, %v26_v15  ;;  %v36_v20 = vadd.f32 %v35_v18, %v34_v16 }
  0x13   :  { %v37_v21 = vmul.f32 0.33333334, %v28_v19  ;;  %v38_v22 = vmul.f32 0.33333334, %v36_v20 }
  0x15   :  { %v39_v23 = vsel %vm17_vm2, %v37_v21, %v38_v22 }
  0x16   :  { %v40_v24 = vsub.f32 %v14_v3, %v39_v23 }
  0x18   :  { %v41_v25 = vmul.f32 %v40_v24, %v40_v24 }
  0x1a   :  { %v42_v26 = vsel %vm17_vm2, %v41_v25, 0.0  ;;  %v51_v27 = vsel %vm17_vm2, 0.0, %v41_v25 }
  0x1b   :  { %v43_v28 = vsel %vm21_vm1, %v42_v26, 0.0  ;;  %v52_v29 = vsel %vm21_vm1, %v51_v27, 0.0 }
  0x1c   :  { %v44_v30 = vrot.slane %v43_v28, 4  ;;  %v53_v31 = vrot.slane %v52_v29, 4 }
  0x1e   :  { %v45_v32 = vadd.f32 %v44_v30, %v43_v28  ;;  %v54_v33 = vadd.f32 %v53_v31, %v52_v29 }
  0x20   :  { %v46_v34 = vrot.slane %v45_v32, 2  ;;  %v55_v35 = vrot.slane %v54_v33, 2 }
  0x22   :  { %v47_v36 = vadd.f32 %v46_v34, %v45_v32  ;;  %v56_v37 = vadd.f32 %v55_v35, %v54_v33 }
  0x24   :  { %v48_v38 = vrot.slane %v47_v36, 1  ;;  %v57_v39 = vrot.slane %v56_v37, 1 }
  0x26   :  { %v49_v40 = vadd.f32 %v48_v38, %v47_v36  ;;  %v58_v41 = vadd.f32 %v57_v39, %v56_v37 }
  0x28   :  { %v50_v42 = vmul.f32 0.33333334, %v49_v40  ;;  %v59_v43 = vmul.f32 0.33333334, %v58_v41 }
  0x2a   :  { %v60_v44 = vadd.f32 1e-05, %v50_v42  ;;  %v71_v45 = vadd.f32 1e-05, %v59_v43 }
  0x2c   :  { %121 = vrsqrt.f32 %v60_v44  ;;  %vm67_vm3 = vweird.f32 %v60_v44  ;;  %vm78_vm5 = vweird.f32 %v71_v45 }
  0x2d   :  { %123 = vrsqrt.f32 %v71_v45 }
  0x32   :  { %v122_v46 = vpop.eup %121 }
  0x33   :  { %v124_v47 = vpop.eup %123  ;;  %v62_v48 = vmul.f32 %v122_v46, %v60_v44  ;;  %vm68_vm4 = vweird.f32 %v122_v46 }
  0x34   :  { %v73_v49 = vmul.f32 %v124_v47, %v71_v45  ;;  %vm79_vm6 = vweird.f32 %v124_v47  ;;  %vm69_vm7 = vmor %vm67_vm3, %vm68_vm4 }
  0x35   :  { %v63_v50 = vmul.f32 %v122_v46, %v62_v48  ;;  %vm80_vm8 = vmor %vm78_vm5, %vm79_vm6 }
  0x36   :  { %v74_v51 = vmul.f32 %v124_v47, %v73_v49 }
  0x37   :  { %v64_v52 = vmul.f32 0.5, %v63_v50 }
  0x38   :  { %v75_v53 = vmul.f32 0.5, %v74_v51 }
  0x39   :  { %v65_v54 = vsub.f32 1.5, %v64_v52 }
  0x3a   :  { %v76_v55 = vsub.f32 1.5, %v75_v53 }
  0x3b   :  { %v66_v56 = vmul.f32 %v122_v46, %v65_v54 }
  0x3c   :  { %v77_v57 = vmul.f32 %v124_v47, %v76_v55 }
  0x3d   :  { %v70_v58 = vsel %vm69_vm7, %v122_v46, %v66_v56 }
  0x3e   :  { %v81_v59 = vsel %vm80_vm8, %v124_v47, %v77_v57 }
  0x3f   :  { %v82_v60 = vsel %vm17_vm2, %v70_v58, %v81_v59 }
  0x40   :  { %v83_v61 = vmul.f32 %v82_v60, %v40_v24 }
  0x42   :  { %119 = vmatmul.msk.f32.vlgmr.msra.gmra.mxu0 %vm85_vm9, %v83_v61 }
  0xbf   :  { %v110_v63 = vpop.f32.mrf.mxu0 }
  0xc0   :  { %v111_v0 = vadd.f32 %v120_v62, %v110_v63 }
  0xc2   :  { %113 = vst [vmem:[%s176_s2] sm:$0x3f] %v111_v0 }

</bundles_post_ra>
